<compile_context>
chip_gen: v7x
topology: tpu7x:2x2x1
jax: 0.10.0
libtpu: 0.0.40
codegen_flags: <defaults>
</compile_context>

<pallas_src>
import functools

import jax
import jax.numpy as jnp
from jax.experimental import pallas as pl
from jax.experimental.pallas import tpu as pltpu

EPS = 1e-5


def _round_up(x, m):
    return ((x + m - 1) // m) * m


# ---------------------------------------------------------------------------
# In-kernel helpers
# ---------------------------------------------------------------------------

def _im2col_conv(src_ref, w_ref, col_ref, *, shifts, src_off, L, C):
    """3x3 conv on a channel-major padded-flat slab as ONE MXU matmul.

    Stacks the 9 lane-shifted tap views of `src_ref` along the contraction dim
    into the bf16 `col_ref` scratch (im2col), then a single (C, 9C) @ (9C, L)
    dot with f32 accumulation (no VPU accumulation chain, 1 MXU issue per conv).
    """
    for t, s in enumerate(shifts):
        col_ref[t * C:(t + 1) * C, :] = src_ref[:, src_off + s: src_off + s + L]
    return jnp.dot(w_ref[...], col_ref[...], preferred_element_type=jnp.float32)


def _masked_stats(acc, interior):
    """Per-channel [sum, sum-of-squares] over interior (real-pixel) positions."""
    am = jnp.where(interior, acc, 0.0)          # computed once, reused for s1 and s2
    s1 = jnp.sum(am, axis=1, keepdims=True)
    s2 = jnp.sum(am * am, axis=1, keepdims=True)
    return jnp.concatenate([s1, s2], axis=1)    # (C, 2)


# ---------------------------------------------------------------------------
# Pass A: conv1 + partial BN1 statistics
# ---------------------------------------------------------------------------

def _conv_stats_kernel(xext_ref, w_ref, mask_ref, y_ref, st_ref, col_ref,
                       *, shifts, pad_ext, L, C):
    # xext_ref: (C, Lext) bf16   zero-padded channel-major flat input tile
    # w_ref   : (C, 9C)   bf16   im2col-stacked conv weight
    # mask_ref: (1, L)    f32    1.0 at interior positions, 0.0 at halo/filler
    # y_ref   : (C, L)    bf16   raw conv1 output tile
    # st_ref  : (C, 2)    f32    per-tile partial [s1, s2]
    # col_ref : (9C, L)   bf16   im2col scratch
    interior = mask_ref[...] != 0.0
    acc = _im2col_conv(xext_ref, w_ref, col_ref,
                       shifts=shifts, src_off=pad_ext, L=L, C=C)
    y_ref[...] = acc.astype(y_ref.dtype)
    st_ref[...] = _masked_stats(acc, interior)


# ---------------------------------------------------------------------------
# Pass B: BN1 fold + ReLU + conv2 + partial BN2 statistics
# ---------------------------------------------------------------------------

def _bn_relu_conv_stats_kernel(y1_ref, w_ref, fold_ref, mask_ref,
                               y2_ref, st_ref, yext_ref, col_ref,
                               *, shifts, pad_ext, L, C):
    interior = mask_ref[...] != 0.0
    scale = fold_ref[:, 0:1]
    shift = fold_ref[:, 1:2]
    a1 = y1_ref[...].astype(jnp.float32)
    # Fused BN-fold + ReLU + halo-mask, staged (bf16) into the halo-extended conv2 input.
    y = jnp.where(interior, jnp.maximum(a1 * scale + shift, 0.0), 0.0)
    zeros_end = jnp.zeros((C, pad_ext), yext_ref.dtype)
    yext_ref[:, 0:pad_ext] = zeros_end                              # cheap, megacore-safe
    yext_ref[:, pad_ext + L:pad_ext + L + pad_ext] = zeros_end
    yext_ref[:, pad_ext:pad_ext + L] = y.astype(yext_ref.dtype)     # lane-aligned store
    acc = _im2col_conv(yext_ref, w_ref, col_ref,
                       shifts=shifts, src_off=pad_ext, L=L, C=C)
    y2_ref[...] = acc
    st_ref[...] = _masked_stats(acc, interior)


# ---------------------------------------------------------------------------
# Pass C: BN2 fold + residual add + ReLU
# ---------------------------------------------------------------------------

def _bn_add_relu_kernel(y2_ref, xres_ref, fold_ref, o_ref):
    scale = fold_ref[:, 0:1]
    shift = fold_ref[:, 1:2]
    o_ref[...] = jnp.maximum(y2_ref[...] * scale + shift + xres_ref[...], 0.0)


# ---------------------------------------------------------------------------
# Host-side helpers (tiny XLA glue)
# ---------------------------------------------------------------------------

def _stack_weight(w, C):
    """OIHW (C, C, 3, 3) -> (C_out, 9*C_in) bf16, columns ordered (tap, cin)."""
    w9 = jnp.transpose(w.astype(jnp.float32), (2, 3, 1, 0)).reshape(9 * C, C)
    return jnp.transpose(w9, (1, 0)).astype(jnp.bfloat16)


def _bn_fold(partial_stats, gamma, beta, n_valid):
    """Reduce per-tile partial sums -> per-channel (scale, shift) BN fold (f32)."""
    s = jnp.sum(partial_stats.astype(jnp.float32), axis=0)             # (C, 2)
    mean = s[:, 0] / float(n_valid)
    var = jnp.maximum(s[:, 1] / float(n_valid) - mean * mean, 0.0)     # clamp one-pass var
    scale = gamma.astype(jnp.float32) * jax.lax.rsqrt(var + EPS)
    shift = beta.astype(jnp.float32) - mean * scale
    return jnp.stack([scale, shift], axis=1)                           # (C, 2)


def _pick_batch_tile(N, C, P):
    """Largest batch tile whose per-step VMEM working set (double-buffered tiles +
    im2col scratch, ~40*C*L bytes) fits a conservative budget that also holds on
    v7x's smaller VMEM, preferring >= 2 grid steps so megacore can split the grid."""
    budget = 40 * 1024 * 1024
    divisors = [d for d in range(1, N + 1) if N % d == 0]
    fits = [d for d in divisors if 40 * C * _round_up(d * P, 128) <= budget]
    if not fits:
        return 1
    multi_step = [d for d in fits if N // d >= 2]
    return max(multi_step) if multi_step else max(fits)


def residual_block(x_nchw, params, *, batch_tile=None):
    """Pallas ResidualBlock forward. x_nchw: (N, C, H, W) float32 (PyTorch layout)."""
    w1, b1, g1, be1, w2, b2, g2, be2 = params
    del b1, b2  # constant per-channel bias before training-mode BN is cancelled by the mean

    x = x_nchw.astype(jnp.float32)
    N, C, H, W = x.shape
    P = (H + 2) * (W + 2)                        # per-image padded-spatial size
    if batch_tile is None:
        batch_tile = _pick_batch_tile(N, C, P)
    if N % batch_tile:
        raise ValueError("batch_tile must divide N")
    T = N // batch_tile                          # grid size (independent batch tiles)
    L = _round_up(batch_tile * P, 128)           # lane-aligned per-tile flat length
    pad_ext = _round_up(W + 3, 128)              # lane-aligned halo extension for tap shifts
    Lext = L + 2 * pad_ext
    n_valid = N * H * W                          # BN population (interior positions)
    shifts = tuple((dy - 1) * (W + 2) + (dx - 1) for dy in range(3) for dx in range(3))

    # --- wrapper-side layout plumbing: channel-major padded-flat batch tiles ---
    xpad = jnp.pad(x, ((0, 0), (0, 0), (1, 1), (1, 1)))              # (N, C, H+2, W+2)
    x_t = xpad.reshape(T, batch_tile, C, H + 2, W + 2)
    x_t = jnp.transpose(x_t, (0, 2, 1, 3, 4)).reshape(T, C, batch_tile * P)
    x_pf = jnp.pad(x_t, ((0, 0), (0, 0), (0, L - batch_tile * P)))   # (T, C, L) f32 residual
    xext = jnp.pad(x_pf, ((0, 0), (0, 0), (pad_ext, pad_ext))).astype(jnp.bfloat16)

    w1c = _stack_weight(w1, C)                                       # (C, 9C) bf16
    w2c = _stack_weight(w2, C)

    rr = jnp.arange(H + 2)
    cc = jnp.arange(W + 2)
    m2d = ((rr >= 1) & (rr <= H))[:, None] & ((cc >= 1) & (cc <= W))[None, :]
    mask = jnp.tile(m2d.reshape(1, P), (1, batch_tile))
    mask = jnp.pad(mask, ((0, 0), (0, L - batch_tile * P))).astype(jnp.float32)  # (1, L)

    cparams = pltpu.CompilerParams(
        dimension_semantics=("parallel",),        # batch tiles are independent (v7x: 2 TCs)
        vmem_limit_bytes=48 * 1024 * 1024)        # explicit; fits v7x's 64 MiB VMEM too

    tile_spec_ext = pl.BlockSpec((None, C, Lext), lambda i: (i, 0, 0))
    tile_spec = pl.BlockSpec((None, C, L), lambda i: (i, 0, 0))
    stat_spec = pl.BlockSpec((None, C, 2), lambda i: (i, 0, 0))
    w_spec = pl.BlockSpec((C, 9 * C), lambda i: (0, 0))
    fold_spec = pl.BlockSpec((C, 2), lambda i: (0, 0))
    mask_spec = pl.BlockSpec((1, L), lambda i: (0, 0))

    # ---- pass A: conv1 + partial BN1 stats ----
    y1, st1 = pl.pallas_call(
        functools.partial(_conv_stats_kernel,
                          shifts=shifts, pad_ext=pad_ext, L=L, C=C),
        out_shape=(jax.ShapeDtypeStruct((T, C, L), jnp.bfloat16),
                   jax.ShapeDtypeStruct((T, C, 2), jnp.float32)),
        grid=(T,),
        in_specs=[tile_spec_ext, w_spec, mask_spec],
        out_specs=(tile_spec, stat_spec),
        scratch_shapes=[pltpu.VMEM((9 * C, L), jnp.bfloat16)],
        compiler_params=cparams,
    )(xext, w1c, mask)
    fold1 = _bn_fold(st1, g1, be1, n_valid)

    # ---- pass B: BN1 fold + ReLU + conv2 + partial BN2 stats ----
    y2, st2 = pl.pallas_call(
        functools.partial(_bn_relu_conv_stats_kernel,
                          shifts=shifts, pad_ext=pad_ext, L=L, C=C),
        out_shape=(jax.ShapeDtypeStruct((T, C, L), jnp.float32),
                   jax.ShapeDtypeStruct((T, C, 2), jnp.float32)),
        grid=(T,),
        in_specs=[tile_spec, w_spec, fold_spec, mask_spec],
        out_specs=(tile_spec, stat_spec),
        scratch_shapes=[pltpu.VMEM((C, Lext), jnp.bfloat16),
                        pltpu.VMEM((9 * C, L), jnp.bfloat16)],
        compiler_params=cparams,
    )(y1, w2c, fold1, mask)
    fold2 = _bn_fold(st2, g2, be2, n_valid)

    # ---- pass C: BN2 fold + residual add + ReLU ----
    out_pf = pl.pallas_call(
        _bn_add_relu_kernel,
        out_shape=jax.ShapeDtypeStruct((T, C, L), jnp.float32),
        grid=(T,),
        in_specs=[tile_spec, tile_spec, fold_spec],
        out_specs=tile_spec,
        compiler_params=cparams,
    )(y2, x_pf, fold2)

    # Strip filler/halo and return to NCHW.
    out = out_pf[:, :, :batch_tile * P].reshape(T, C, batch_tile, H + 2, W + 2)
    out = jnp.transpose(out, (0, 2, 1, 3, 4)).reshape(N, C, H + 2, W + 2)
    return out[:, :, 1:H + 1, 1:W + 1]


def residual_block_reference(x_nchw, params):
    """Pure-JAX reference matching PyTorch ResidualBlock.forward (training-mode BN)."""
    w1, b1, g1, be1, w2, b2, g2, be2 = params

    def conv(x, w, b):
        y = jax.lax.conv_general_dilated(
            x, w, window_strides=(1, 1), padding=((1, 1), (1, 1)),
            dimension_numbers=("NCHW", "OIHW", "NCHW"))
        return y + b[None, :, None, None]

    def bn(x, g, be):
        mean = jnp.mean(x, axis=(0, 2, 3), keepdims=True)
        var = jnp.mean((x - mean) ** 2, axis=(0, 2, 3), keepdims=True)
        return ((x - mean) * jax.lax.rsqrt(var + EPS) * g[None, :, None, None]
                + be[None, :, None, None])

    out = jnp.maximum(bn(conv(x_nchw, w1, b1), g1, be1), 0.0)
    out = bn(conv(out, w2, b2), g2, be2) + x_nchw
    return jnp.maximum(out, 0.0)


if __name__ == "__main__":
    # Shapes consistent with the module: x is NCHW, channels preserved by the block.
    N, C, H, W = 2, 4, 16, 16
    key = jax.random.PRNGKey(0)
    kx, k1, k2, k3, k4, k5, k6 = jax.random.split(key, 7)

    x = jax.random.normal(kx, (N, C, H, W), dtype=jnp.float32)

    # Deterministic synthetic parameters (shapes from nn.Conv2d / nn.BatchNorm2d __init__).
    w1 = 0.1 * jax.random.normal(k1, (C, C, 3, 3), dtype=jnp.float32)   # conv1.weight (OIHW)
    b1 = 0.1 * jax.random.normal(k2, (C,), dtype=jnp.float32)           # conv1.bias
    g1 = 1.0 + 0.1 * jax.random.normal(k3, (C,), dtype=jnp.float32)     # bn1.weight
    be1 = 0.1 * jax.random.normal(k4, (C,), dtype=jnp.float32)          # bn1.bias
    w2 = 0.1 * jax.random.normal(k5, (C, C, 3, 3), dtype=jnp.float32)   # conv2.weight
    b2 = 0.1 * jax.random.normal(k6, (C,), dtype=jnp.float32)           # conv2.bias
    g2 = jnp.ones((C,), dtype=jnp.float32)                              # bn2.weight (default)
    be2 = jnp.zeros((C,), dtype=jnp.float32)                            # bn2.bias (default)

    params = (w1, b1, g1, be1, w2, b2, g2, be2)

    # TODO(synk): training-mode BatchNorm also mutates running_mean/running_var as a side
    # effect; that stateful update is not reproduced (it does not affect the forward output).

    out = residual_block(x, params)
    out = jax.block_until_ready(out)

    ref = residual_block_reference(x, params)
    assert out.shape == (N, C, H, W)
    # bf16 matmul operands + bf16 intermediate round-trip -> loosened tolerance vs f32 ref.
    assert jnp.allclose(out, ref, atol=5e-2, rtol=5e-2), (
        f"max abs err = {jnp.max(jnp.abs(out - ref))}")

    print("KERNEL_OK")
</pallas_src>

<mosaic_0001>
module attributes {stable_mosaic.version = 11 : i64} {
  func.func @_conv_stats_kernel(%arg0: i32, %arg1: memref<1x4x640xbf16, #tpu.memory_space<vmem>>, %arg2: memref<4x36xbf16, #tpu.memory_space<vmem>>, %arg3: memref<1x384xf32, #tpu.memory_space<vmem>>, %arg4: memref<1x4x384xbf16, #tpu.memory_space<vmem>>, %arg5: memref<1x4x2xf32, #tpu.memory_space<vmem>>, %arg6: memref<36x384xbf16, #tpu.memory_space<vmem>>) attributes {dimension_semantics = [#tpu.dimension_semantics<parallel>], iteration_bounds = array<i64: 2>, scalar_prefetch = 0 : i64, scratch_operands = 1 : i64, tpu.core_type = #tpu.core_type<tc>, window_params = [{transform_indices = @transform_0, window_bounds = array<i64: 1, 4, 640>}, {pipeline_mode = #tpu.pipeline_mode<synchronous>, transform_indices = @transform_1, window_bounds = array<i64: 4, 36>}, {pipeline_mode = #tpu.pipeline_mode<synchronous>, transform_indices = @transform_2, window_bounds = array<i64: 1, 384>}, {transform_indices = @transform_3, window_bounds = array<i64: 1, 4, 384>}, {transform_indices = @transform_4, window_bounds = array<i64: 1, 4, 2>}]} {
    %c0 = arith.constant 0 : index
    %c0_0 = arith.constant 0 : index
    %0 = vector.load %arg3[%c0, %c0_0] : memref<1x384xf32, #tpu.memory_space<vmem>>, vector<1x384xf32>
    %cst = arith.constant 0.000000e+00 : f32
    %1 = vector.broadcast %cst : f32 to vector<1x384xf32>
    %2 = arith.cmpf one, %0, %1 : vector<1x384xf32>
    %c0_1 = arith.constant 0 : index
    %c0_2 = arith.constant 0 : index
    %c109 = arith.constant 109 : index
    %3 = vector.load %arg1[%c0_1, %c0_2, %c109] : memref<1x4x640xbf16, #tpu.memory_space<vmem>>, vector<1x4x384xbf16>
    %4 = vector.shape_cast %3 : vector<1x4x384xbf16> to vector<4x384xbf16>
    %c0_3 = arith.constant 0 : index
    %c0_4 = arith.constant 0 : index
    %5 = vector.load %arg6[%c0_3, %c0_4] : memref<36x384xbf16, #tpu.memory_space<vmem>>, vector<4x384xbf16>
    tpu.vector_store %arg6[%c0_3, %c0_4], %4 {strides = array<i32>} : memref<36x384xbf16, #tpu.memory_space<vmem>>, vector<4x384xbf16>,
    %c0_5 = arith.constant 0 : index
    %c0_6 = arith.constant 0 : index
    %c110 = arith.constant 110 : index
    %6 = vector.load %arg1[%c0_5, %c0_6, %c110] : memref<1x4x640xbf16, #tpu.memory_space<vmem>>, vector<1x4x384xbf16>
    %7 = vector.shape_cast %6 : vector<1x4x384xbf16> to vector<4x384xbf16>
    %c4 = arith.constant 4 : index
    %c0_7 = arith.constant 0 : index
    %8 = vector.load %arg6[%c4, %c0_7] : memref<36x384xbf16, #tpu.memory_space<vmem>>, vector<4x384xbf16>
    tpu.vector_store %arg6[%c4, %c0_7], %7 {strides = array<i32>} : memref<36x384xbf16, #tpu.memory_space<vmem>>, vector<4x384xbf16>,
    %c0_8 = arith.constant 0 : index
    %c0_9 = arith.constant 0 : index
    %c111 = arith.constant 111 : index
    %9 = vector.load %arg1[%c0_8, %c0_9, %c111] : memref<1x4x640xbf16, #tpu.memory_space<vmem>>, vector<1x4x384xbf16>
    %10 = vector.shape_cast %9 : vector<1x4x384xbf16> to vector<4x384xbf16>
    %c8 = arith.constant 8 : index
    %c0_10 = arith.constant 0 : index
    %11 = vector.load %arg6[%c8, %c0_10] : memref<36x384xbf16, #tpu.memory_space<vmem>>, vector<4x384xbf16>
    tpu.vector_store %arg6[%c8, %c0_10], %10 {strides = array<i32>} : memref<36x384xbf16, #tpu.memory_space<vmem>>, vector<4x384xbf16>,
    %c0_11 = arith.constant 0 : index
    %c0_12 = arith.constant 0 : index
    %c127 = arith.constant 127 : index
    %12 = vector.load %arg1[%c0_11, %c0_12, %c127] : memref<1x4x640xbf16, #tpu.memory_space<vmem>>, vector<1x4x384xbf16>
    %13 = vector.shape_cast %12 : vector<1x4x384xbf16> to vector<4x384xbf16>
    %c12 = arith.constant 12 : index
    %c0_13 = arith.constant 0 : index
    %14 = vector.load %arg6[%c12, %c0_13] : memref<36x384xbf16, #tpu.memory_space<vmem>>, vector<4x384xbf16>
    tpu.vector_store %arg6[%c12, %c0_13], %13 {strides = array<i32>} : memref<36x384xbf16, #tpu.memory_space<vmem>>, vector<4x384xbf16>,
    %c0_14 = arith.constant 0 : index
    %c0_15 = arith.constant 0 : index
    %c128 = arith.constant 128 : index
    %15 = vector.load %arg1[%c0_14, %c0_15, %c128] : memref<1x4x640xbf16, #tpu.memory_space<vmem>>, vector<1x4x384xbf16>
    %16 = vector.shape_cast %15 : vector<1x4x384xbf16> to vector<4x384xbf16>
    %c16 = arith.constant 16 : index
    %c0_16 = arith.constant 0 : index
    %17 = vector.load %arg6[%c16, %c0_16] : memref<36x384xbf16, #tpu.memory_space<vmem>>, vector<4x384xbf16>
    tpu.vector_store %arg6[%c16, %c0_16], %16 {strides = array<i32>} : memref<36x384xbf16, #tpu.memory_space<vmem>>, vector<4x384xbf16>,
    %c0_17 = arith.constant 0 : index
    %c0_18 = arith.constant 0 : index
    %c129 = arith.constant 129 : index
    %18 = vector.load %arg1[%c0_17, %c0_18, %c129] : memref<1x4x640xbf16, #tpu.memory_space<vmem>>, vector<1x4x384xbf16>
    %19 = vector.shape_cast %18 : vector<1x4x384xbf16> to vector<4x384xbf16>
    %c20 = arith.constant 20 : index
    %c0_19 = arith.constant 0 : index
    %20 = vector.load %arg6[%c20, %c0_19] : memref<36x384xbf16, #tpu.memory_space<vmem>>, vector<4x384xbf16>
    tpu.vector_store %arg6[%c20, %c0_19], %19 {strides = array<i32>} : memref<36x384xbf16, #tpu.memory_space<vmem>>, vector<4x384xbf16>,
    %c0_20 = arith.constant 0 : index
    %c0_21 = arith.constant 0 : index
    %c145 = arith.constant 145 : index
    %21 = vector.load %arg1[%c0_20, %c0_21, %c145] : memref<1x4x640xbf16, #tpu.memory_space<vmem>>, vector<1x4x384xbf16>
    %22 = vector.shape_cast %21 : vector<1x4x384xbf16> to vector<4x384xbf16>
    %c24 = arith.constant 24 : index
    %c0_22 = arith.constant 0 : index
    %23 = vector.load %arg6[%c24, %c0_22] : memref<36x384xbf16, #tpu.memory_space<vmem>>, vector<4x384xbf16>
    tpu.vector_store %arg6[%c24, %c0_22], %22 {strides = array<i32>} : memref<36x384xbf16, #tpu.memory_space<vmem>>, vector<4x384xbf16>,
    %c0_23 = arith.constant 0 : index
    %c0_24 = arith.constant 0 : index
    %c146 = arith.constant 146 : index
    %24 = vector.load %arg1[%c0_23, %c0_24, %c146] : memref<1x4x640xbf16, #tpu.memory_space<vmem>>, vector<1x4x384xbf16>
    %25 = vector.shape_cast %24 : vector<1x4x384xbf16> to vector<4x384xbf16>
    %c28 = arith.constant 28 : index
    %c0_25 = arith.constant 0 : index
    %26 = vector.load %arg6[%c28, %c0_25] : memref<36x384xbf16, #tpu.memory_space<vmem>>, vector<4x384xbf16>
    tpu.vector_store %arg6[%c28, %c0_25], %25 {strides = array<i32>} : memref<36x384xbf16, #tpu.memory_space<vmem>>, vector<4x384xbf16>,
    %c0_26 = arith.constant 0 : index
    %c0_27 = arith.constant 0 : index
    %c147 = arith.constant 147 : index
    %27 = vector.load %arg1[%c0_26, %c0_27, %c147] : memref<1x4x640xbf16, #tpu.memory_space<vmem>>, vector<1x4x384xbf16>
    %28 = vector.shape_cast %27 : vector<1x4x384xbf16> to vector<4x384xbf16>
    %c32 = arith.constant 32 : index
    %c0_28 = arith.constant 0 : index
    %29 = vector.load %arg6[%c32, %c0_28] : memref<36x384xbf16, #tpu.memory_space<vmem>>, vector<4x384xbf16>
    tpu.vector_store %arg6[%c32, %c0_28], %28 {strides = array<i32>} : memref<36x384xbf16, #tpu.memory_space<vmem>>, vector<4x384xbf16>,
    %c0_29 = arith.constant 0 : index
    %c0_30 = arith.constant 0 : index
    %30 = vector.load %arg2[%c0_29, %c0_30] : memref<4x36xbf16, #tpu.memory_space<vmem>>, vector<4x36xbf16>
    %c0_31 = arith.constant 0 : index
    %c0_32 = arith.constant 0 : index
    %31 = vector.load %arg6[%c0_31, %c0_32] : memref<36x384xbf16, #tpu.memory_space<vmem>>, vector<36x384xbf16>
    %cst_33 = arith.constant dense<0.000000e+00> : vector<4x384xf32>
    %32 = tpu.matmul %30, %31, %cst_33 {dimension_numbers = #tpu.dot_dimension_numbers<[1], [0], [0], [1], [0, 0, 1, 1], [], []>} : vector<4x36xbf16>, vector<36x384xbf16>, vector<4x384xf32> -> vector<4x384xf32>
    %33 = arith.truncf %32 : vector<4x384xf32> to vector<4x384xbf16>
    %c0_34 = arith.constant 0 : index
    %c0_35 = arith.constant 0 : index
    %c0_36 = arith.constant 0 : index
    %34 = vector.load %arg4[%c0_34, %c0_35, %c0_36] : memref<1x4x384xbf16, #tpu.memory_space<vmem>>, vector<1x4x384xbf16>
    %35 = vector.shape_cast %34 : vector<1x4x384xbf16> to vector<4x384xbf16>
    %36 = vector.shape_cast %33 : vector<4x384xbf16> to vector<1x4x384xbf16>
    tpu.vector_store %arg4[%c0_34, %c0_35, %c0_36], %36 {strides = array<i32>} : memref<1x4x384xbf16, #tpu.memory_space<vmem>>, vector<1x4x384xbf16>,
    %cst_37 = arith.constant 0.000000e+00 : f32
    %37 = vector.shape_cast %2 : vector<1x384xi1> to vector<1x384xi1>
    %38 = vector.broadcast %37 : vector<1x384xi1> to vector<4x384xi1>
    %39 = vector.broadcast %cst_37 : f32 to vector<4x384xf32>
    %40 = arith.select %38, %32, %39 : vector<4x384xi1>, vector<4x384xf32>
    %cst_38 = arith.constant dense<0.000000e+00> : vector<4xf32>
    %41 = vector.multi_reduction <add>, %40, %cst_38 [1] : vector<4x384xf32> to vector<4xf32>
    %42 = vector.shape_cast %41 : vector<4xf32> to vector<4x1xf32>
    %43 = arith.mulf %40, %40 : vector<4x384xf32>
    %cst_39 = arith.constant dense<0.000000e+00> : vector<4xf32>
    %44 = vector.multi_reduction <add>, %43, %cst_39 [1] : vector<4x384xf32> to vector<4xf32>
    %45 = vector.shape_cast %44 : vector<4xf32> to vector<4x1xf32>
    %46 = tpu.concatenate %42, %45 in 1 : vector<4x1xf32>, vector<4x1xf32> -> vector<4x2xf32>
    %c0_40 = arith.constant 0 : index
    %c0_41 = arith.constant 0 : index
    %c0_42 = arith.constant 0 : index
    %47 = vector.load %arg5[%c0_40, %c0_41, %c0_42] : memref<1x4x2xf32, #tpu.memory_space<vmem>>, vector<1x4x2xf32>
    %48 = vector.shape_cast %47 : vector<1x4x2xf32> to vector<4x2xf32>
    %49 = vector.shape_cast %46 : vector<4x2xf32> to vector<1x4x2xf32>
    tpu.vector_store %arg5[%c0_40, %c0_41, %c0_42], %49 {strides = array<i32>} : memref<1x4x2xf32, #tpu.memory_space<vmem>>, vector<1x4x2xf32>,
    return
  }
  func.func @transform_0(%arg0: i32) -> (i32, i32, i32) {
    %c0_i32 = arith.constant 0 : i32
    %c0_i32_0 = arith.constant 0 : i32
    %c0_i32_1 = arith.constant 0 : i32
    return %arg0, %c0_i32, %c0_i32_0 : i32, i32, i32
  }
  func.func @transform_1(%arg0: i32) -> (i32, i32) {
    %c0_i32 = arith.constant 0 : i32
    %c0_i32_0 = arith.constant 0 : i32
    %c0_i32_1 = arith.constant 0 : i32
    return %c0_i32, %c0_i32_0 : i32, i32
  }
  func.func @transform_2(%arg0: i32) -> (i32, i32) {
    %c0_i32 = arith.constant 0 : i32
    %c0_i32_0 = arith.constant 0 : i32
    %c0_i32_1 = arith.constant 0 : i32
    return %c0_i32, %c0_i32_0 : i32, i32
  }
  func.func @transform_3(%arg0: i32) -> (i32, i32, i32) {
    %c0_i32 = arith.constant 0 : i32
    %c0_i32_0 = arith.constant 0 : i32
    %c0_i32_1 = arith.constant 0 : i32
    return %arg0, %c0_i32, %c0_i32_0 : i32, i32, i32
  }
  func.func @transform_4(%arg0: i32) -> (i32, i32, i32) {
    %c0_i32 = arith.constant 0 : i32
    %c0_i32_0 = arith.constant 0 : i32
    %c0_i32_1 = arith.constant 0 : i32
    return %arg0, %c0_i32, %c0_i32_0 : i32, i32, i32
  }
}

</mosaic_0001>

<bundles_post_ra>
// kernel: tpu_custom_call.1
= control target key start
LH: loop header
LB: loop body
LE: loop exit
PB: predicated region body
PF: predicated region fallthrough
CT: control target
= control target key end

     0   :  { %10 = vsyncpa [#allocation4], 0  ;;  %s1281_s0 = inlined_call_operand.hbm [shape: bf16[2,4,640], index: 0, kind: input, shape index: {}]   ;;  %s1282_s1 = inlined_call_operand.vmem [shape: bf16[4,36], index: 1, kind: input, shape index: {}]   ;;  %s1283_s2 = inlined_call_operand.vmem [shape: f32[1,384], index: 2, kind: input, shape index: {}]   ;;  %s1284_s3 = inlined_call_operand.hbm [shape: bf16[2,4,384], index: 3, kind: output, shape index: {0}]   ;;  %s1285_s4 = inlined_call_operand.vmem [shape: f32[2,4,2], index: 4, kind: output, shape index: {1}]  }
   0x1   :  { %12 = vsyncpa [#allocation4 + $0x1], 0 }
   0x2   :  { %13 = vsyncpa [#allocation5], 0 }
   0x3   :  { %15 = vsyncpa [#allocation5 + $0x1], 0  ;;  %s1079_s15 = smov 0   ;;  %s1081_s16 = smov 0  }
   0x4   :  { %s1083_s17 = smov 0   ;;  %s1085_s18 = smov 0  }
   0x5 LB: > { %s1100_s19 = sadd.s32 4294967295, %s1038_s18   ;;  %s825_s20 = sadd.s32 4294967294, %s1038_s18   ;;  %s1038_s18 = sphi %s1085_s18, %s1299_s18   ;;  %s1034_s17 = sphi %s1083_s17, %s1298_s17   ;;  %s1030_s16 = sphi %s1081_s16, %s1297_s16   ;;  %s1026_s15 = sphi %s1079_s15, %s1296_s15  }
   0x6   : > { %s1104_s21 = sadd.s32 1, %s1038_s18   ;;  %s28_s22 = sadd.s32 1, %s1034_s17 }
   0x7   : > { %s25_s23 = ssub.s32 %s1038_s18, %s1104_s21  ;;  %p35_p0 = scmp.ne.s32.totalorder %s1034_s17, %s1030_s16 }
   0x8   : > { %p26_p1 = scmp.eq.s32.totalorder %s25_s23, 0  ;;  %p36_p2 = scmp.eq.s32.totalorder %s1038_s18, 0 }
   0x9   : > { %p41_p3 = scmp.ne.s32.totalorder %s1030_s16, %s1026_s15  ;;  %p42_p4 = scmp.eq.s32.totalorder %s1100_s19, 0 }
   0xa   : > { %s1116_s24 = scalar_select %p26_p1, %s1034_s17, %s28_s22  }
   0xb   : > { %p37_p5 = por %p36_p2, %p35_p0  ;;  %p1118_p6 = por %p42_p4, %p41_p3 }
   0xc   : > { %p107_p7 = scmp.eq.s32.totalorder %s1100_s19, 1  ;;  %p113_p8 = scmp.eq.s32.totalorder %s825_s20, 1 }
   0xd   : > { %p880_p10 = scmp.lt.s32.totalorder %s1038_s18, 2  ;;  %s165_s28 = sand.u32 1, %s1034_s17  }
   0xe   : > { %p1125_p11 = por %p107_p7, %p35_p0  ;;  %p1129_p12 = por %p113_p8, %p41_p3 }
   0xf   : > { %s864_s29 = smul.u32 160, %s1038_s18  ;;  %p1140_p13 = pnand %p880_p10, %p37_p5 }
  0x10   : > { %s1288_s26 = scalar_select %p1125_p11, 1, 0 }
  0x11   : > { %s1289_s27 = scalar_select %p1129_p12, 1, 0 }
  0x12   : > { %s863_s30 = smul.u32 10, %s165_s28  ;;  %s1138_s7 = scalar_lea.hbm %s1281_s0, %s864_s29 }
  0x13   : > { %s166_s11 = scalar_lea.sflag [#allocation4], %s165_s28  ;;  %s942_s12 = scalar_lea.hbm %s1138_s7, 160 }
  0x14   : > { %s169_s9 = scalar_lea.vmem [#allocation3], %s863_s30  ;;  %p943_p2 = scmp.ne.s32.totalorder %s1138_s7, %s942_s12 }
  0x15   : > { %s177_s10 = sshll.u32 %s169_s9, 4  ;;  %p944_p3 = pneg %p1140_p13  ;;  %s1145_s10 = int_to_ptr.vmem [resolvable:$true] %s177_s10 }
  0x16   : > { %s947_s20 = scalar_lea.hbm %s1281_s0, 320  ;;  %p948_p7 = scmp.lt.u32.totalorder %s1138_s7, %s1281_s0 }
  0x17   : > { %p945_p4 = pnand %p944_p3, %p943_p2  ;;  %p949_p8 = scmp.lt.u32.totalorder %s947_s20, %s942_s12 }
  0x18   : > { %p951_p9 = scmp.lt.u32.totalorder %s942_s12, %s1138_s7 }
  0x19   : > { %p946_p5 = pneg %p945_p4  ;;  %p950_p10 = por %p949_p8, %p948_p7 }
  0x1b   : > { %p952_p0 = por %p951_p9, %p950_p10 }
  0x1d   : > { %p953_p1 = pnand %p952_p0, %p946_p5 }
  0x1f   : > { %956 = shalt.err (!%p953_p1)
}
  0x20   : > { %s957_s28 = scalar_lea.vmem %s1145_s10, 160  ;;  %s1040_s29 = smov [#allocation3]  }
  0x21   : > { %p958_p2 = scmp.ne.s32.totalorder %s1145_s10, %s957_s28  ;;  %s962_s30 = sshll.u32 %s1040_s29, 4  ;;  %s963_s30 = int_to_ptr.vmem [resolvable:$false] %s962_s30 }
  0x22   : > { %s964_s5 = scalar_lea.vmem %s963_s30, 320  ;;  %p965_p11 = scmp.lt.s32.totalorder %s1145_s10, %s963_s30 }
  0x23   : > { %p960_p4 = pnand %p958_p2, %p944_p3  ;;  %p966_p7 = scmp.lt.s32.totalorder %s964_s5, %s957_s28 }
  0x25   : > { %p961_p12 = pneg %p960_p4  ;;  %p967_p8 = por %p966_p7, %p965_p11 }
  0x27   : > { %p968_p9 = pnand %p967_p8, %p961_p12 }
  0x29   : > { %971 = shalt.err (!%p968_p9)
}
  0x2a   : > { %875 = dma.hbm_to_vmem [thread:$0]  (!%p1140_p13), %s1138_s7, 160, %s1145_s10, %s166_s11  }
  0x2b   : > { %p1291_p0 = scmp.lt.s32.totalorder %s1038_s18, 3  ;;  %p1292_p1 = scmp.ge.s32.totalorder %s1038_s18, 1 }
  0x2d   : > { %p183_p3 = pnand %p1292_p1, %p1291_p0 }
  0x2e   : > { %s1178_s6 = sand.u32 (!%p183_p3), 1, %s1030_s16  }
  0x2f   : > { %186 = sbr.rel (%p183_p3) target bundleno = 590 (0x24e), region = 32  ;;  %s189_s12 = scalar_lea.sflag (!%p183_p3), [#allocation4], %s1178_s6 }
  0x30   : > { %s865_s9 = smul.u32 (!%p183_p3), 10, %s1178_s6 }
  0x32   : > { %s192_s13 = scalar_lea.vmem (!%p183_p3), [#allocation3], %s865_s9 }
  0x36   : > { %1017 = dma.done.wait (%p1118_p6), %s189_s12, 160  }
  0x37   : > { %1019 = vsyncadd (%p1118_p6), %s189_s12, 4294967136  ;;  %v234_v0 = vlaneseq  ;;  %v1041_v1 = vmov 1983009808   ;;  %v260_v6 = vld [vmem:[%s192_s13] sm:$0xff]  ;;  %s1042_s7 = smov 18   ;;  %s1043_s8 = smov 19  }
  0x38   : > { %v232_v2 = vunpack.c.l.s4 %v1041_v1  ;;  %v262_v8 = vcombine.low %v260_v6, %v260_v6  ;;  %v230_v9 = vcombine.high %v260_v6, %v260_v6  ;;  %v353_v10 = vld [vmem:[%s192_s13 + $0x2] sm:$0x3f]  ;;  %s1044_s25 = smov 1   ;;  %s1045_s10 = smov 17   ;;  %v1046_v16 = vmov 0.0  }
  0x39   : > { %v1186_v3 = vshrl.u32 %v234_v0, 7  ;;  %v355_v13 = vcombine.high %v353_v10, %v353_v10  ;;  %831 = vst.sshfl [vmem:[#allocation2 + $0x18] sm:$0xf pattern:$0x76325410] %v353_v10  ;;  %v374_v14 = vld [vmem:[%s192_s13 + $0x2] sm:$0xff]  ;;  %853 = vmatprep.subr.bf16.mxu1 %v1046_v16 }
  0x3a   : > { %v233_v4 = vunpack.c.0.s8 %v232_v2  ;;  %v376_v15 = vcombine.low %v374_v14, %v374_v14  ;;  %v407_v19 = vcombine.high %v374_v14, %v374_v14  ;;  %s1047_s11 = smov 127   ;;  %s1048_s14 = smov 111   ;;  %v1051_v21 = vmov 0  }
  0x3b   : > { %832 = vst.sshfl [vmem:[#allocation2 + $0x20] sm:$0x3 pattern:$0x76325410] %v355_v13  ;;  %s1049_s20 = smov 110   ;;  %s1050_s22 = smov 109   ;;  %595 = vmatprep.mubr.bf16.mxu0 %v1051_v21 }
  0x3c   : > { %v1189_v5 = vsub.s32 %v233_v4, %v1186_v3  ;;  %vm1052_vm0 = vmmov 0   ;;  %vm284_vm1 = vcmask 146432   ;;  %vm346_vm2 = vcmask 7168   ;;  %s866_s5 = smul.u32 6, %s1178_s6  ;;  %p1293_p11 = scmp.ne.s32.totalorder %s1288_s26, 0 }
  0x3d   : > { %859 = vmatprep.mubr.msk.bf16.mxu1 %vm1052_vm0, %v1046_v16  ;;  %vm251_vm3 = vcmask 1043456   ;;  %vm253_vm4 = vcmask 154624   ;;  %vm315_vm5 = vcmask 138240   ;;  %vm398_vm6 = vcmask 1039360   ;;  %s867_s12 = smul.u32 96, %s1100_s19 }
  0x3e   : > { %v276_v7 = vrot.slane %v260_v6, %v1189_v5  ;;  %v269_v11 = vrot.slane %v262_v8, %v1189_v5  ;;  %v244_v12 = vrot.slane %v230_v9, %v1189_v5  ;;  %v390_v17 = vrot.slane %v374_v14, %v1189_v5  ;;  %s214_s9 = scalar_lea.vmem [#allocation6], %s866_s5 }
  0x3f   : > { %v383_v18 = vrot.slane %v376_v15, %v1189_v5  ;;  %v421_v20 = vrot.slane %v407_v19, %v1189_v5  ;;  %vm429_vm7 = vcmask 908288   ;;  %vm460_vm8 = vcmask 900096   ;;  %s728_s13 = sshll.u32 %s214_s9, 4  ;;  %s729_s13 = int_to_ptr.vmem [resolvable:$true] %s728_s13 }
  0x40   : > { %279 = vrot.lane.b32.xlu1 %v276_v7, %s1042_s7  ;;  %245 = vrot.lane.b32.xlu0 %v276_v7, %s1043_s8  ;;  %vm491_vm9 = vcmask 891904   ;;  %vm553_vm10 = vcmask 1041408   ;;  %vm549_vm11 = vcmask 293888  }
  0x44   : > { %341 = vrot.lane.b32.xlu1 %v276_v7, %s1044_s25  ;;  %308 = vrot.lane.b32.xlu0 %v276_v7, %s1045_s10 }
  0x48   : > { %277 = vrot.lane.b32.xlu1 %v269_v11, %s1042_s7  ;;  %247 = vrot.lane.b32.xlu0 %v244_v12, %s1043_s8 }
  0x4c   : > { %310 = vrot.lane.b32.xlu1 %v244_v12, %s1045_s10  ;;  %339 = vrot.lane.b32.xlu0 %v269_v11, %s1044_s25  ;;  %s1237_s25 = scalar_lea.hbm %s1284_s3, %s867_s12  ;;  %s710_s10 = scalar_lea.sflag [#allocation5], %s1178_s6 }
  0x50   : > { %393 = vrot.lane.b32.xlu1 %v390_v17, %s1047_s11  ;;  %391 = vrot.lane.b32.xlu0 %v383_v18, %s1047_s11  ;;  %s972_s11 = scalar_lea.vmem %s729_s13, 96 }
  0x51   : > { %p973_p6 = scmp.ne.s32.totalorder %s729_s13, %s972_s11 }
  0x53   : > { %p974_p12 = pnand %p973_p6, %p1293_p11 }
  0x54   : > { %424 = vrot.lane.b32.xlu1 %v421_v20, %s1048_s14  ;;  %422 = vrot.lane.b32.xlu0 %v390_v17, %s1048_s14  ;;  %s1053_s14 = smov [#allocation6]  }
  0x55   : > { %p975_p13 = pneg %p974_p12 }
  0x58   : > { %455 = vrot.lane.b32.xlu1 %v390_v17, %s1049_s20  ;;  %453 = vrot.lane.b32.xlu0 %v383_v18, %s1049_s20  ;;  %s976_s20 = sshll.u32 %s1053_s14, 4  ;;  %s977_s20 = int_to_ptr.vmem [resolvable:$false] %s976_s20 }
  0x59   : > { %p979_p5 = scmp.lt.s32.totalorder %s729_s13, %s977_s20 }
  0x5c   : > { %486 = vrot.lane.b32.xlu1 %v421_v20, %s1050_s22  ;;  %484 = vrot.lane.b32.xlu0 %v390_v17, %s1050_s22  ;;  %s978_s22 = scalar_lea.vmem %s977_s20, 192 }
  0x5d   : > { %p980_p10 = scmp.lt.s32.totalorder %s978_s22, %s972_s11 }
  0x5f   : > { %p981_p2 = por %p980_p10, %p979_p5 }
  0x61   : > { %p982_p4 = pnand %p981_p2, %p975_p13 }
  0xb2   : > { %v280_v22 = vpop.permute.xlu1 %279  ;;  %v246_v23 = vpop.permute.xlu0 %245 }
  0xb3   : > { %v282_v24 = vrot.slane %v280_v22, 4  ;;  %v249_v32 = vrot.slane %v246_v23, 4 }
  0xb5   : > { %v286_v25 = vsel %vm284_vm1, %v280_v22, %v282_v24 }
  0xb6   : > { %290 = vst [vmem:[#allocation2 + $0x8] sm:$0xc] %v286_v25  ;;  %v342_v26 = vpop.permute.xlu1 %341  ;;  %v309_v27 = vpop.permute.xlu0 %308 }
  0xb7   : > { %v344_v28 = vrot.slane %v342_v26, 4  ;;  %v312_v42 = vrot.slane %v309_v27, 4 }
  0xb9   : > { %v348_v29 = vsel %vm346_vm2, %v342_v26, %v344_v28 }
  0xba   : > { %352 = vst [vmem:[#allocation2 + $0x14] sm:$0xc] %v348_v29  ;;  %v278_v30 = vpop.permute.xlu1 %277  ;;  %v248_v31 = vpop.permute.xlu0 %247  ;;  %v498_v29 = vld [vmem:[%s1282_s1] sm:$0x3] }
  0xbb   : > { %v281_v33 = vrot.slane %v278_v30, 4  ;;  %v250_v34 = vrot.slane %v248_v31, 4 }
  0xbd   : > { %v283_v35 = vsel %vm251_vm3, %v281_v33, %v282_v24  ;;  %v252_v36 = vsel %vm251_vm3, %v249_v32, %v250_v34  ;;  %v255_v37 = vsel %vm253_vm4, %v248_v31, %v250_v34  ;;  %v679_v31 = vsub.s32 2, %v1186_v3 }
  0xbe   : > { %v285_v38 = vsel %vm284_vm1, %v278_v30, %v283_v35  ;;  %v254_v39 = vsel %vm253_vm4, %v246_v23, %v252_v36  ;;  %259 = vst [vmem:[#allocation2 + $0x8] sm:$0x3] %v255_v37  ;;  %v311_v40 = vpop.permute.xlu1 %310  ;;  %v340_v41 = vpop.permute.xlu0 %339  ;;  %v671_v32 = vsub.s32 0, %v1186_v3  ;;  %v675_v34 = vsub.s32 1, %v1186_v3 }
  0xbf   : > { %289 = vst [vmem:[#allocation2] sm:$0xcc] %v285_v38  ;;  %258 = vst [vmem:[#allocation2] sm:$0x33] %v254_v39  ;;  %v313_v43 = vrot.slane %v311_v40, 4  ;;  %v343_v44 = vrot.slane %v340_v41, 4 }
  0xc1   : > { %v314_v45 = vsel %vm251_vm3, %v312_v42, %v313_v43  ;;  %v317_v46 = vsel %vm315_vm5, %v311_v40, %v313_v43  ;;  %v345_v47 = vsel %vm251_vm3, %v343_v44, %v344_v28 }
  0xc2   : > { %v316_v48 = vsel %vm315_vm5, %v309_v27, %v314_v45  ;;  %321 = vst [vmem:[#allocation2 + $0x14] sm:$0x3] %v317_v46  ;;  %v347_v49 = vsel %vm346_vm2, %v340_v41, %v345_v47  ;;  %v394_v50 = vpop.permute.xlu1 %393  ;;  %v392_v51 = vpop.permute.xlu0 %391 }
  0xc3   : > { %320 = vst [vmem:[#allocation2 + $0xc] sm:$0x33] %v316_v48  ;;  %351 = vst [vmem:[#allocation2 + $0xc] sm:$0xcc] %v347_v49  ;;  %v396_v52 = vrot.slane %v394_v50, 4  ;;  %v395_v53 = vrot.slane %v392_v51, 4 }
  0xc5   : > { %v400_v54 = vsel %vm398_vm6, %v394_v50, %v396_v52  ;;  %v397_v55 = vsel %vm251_vm3, %v395_v53, %v396_v52 }
  0xc6   : > { %404 = vst [vmem:[#allocation2 + $0x20] sm:$0xc] %v400_v54  ;;  %v399_v56 = vsel %vm398_vm6, %v392_v51, %v397_v55  ;;  %v425_v57 = vpop.permute.xlu1 %424  ;;  %v423_v58 = vpop.permute.xlu0 %422 }
  0xc7   : > { %403 = vst [vmem:[#allocation2 + $0x18] sm:$0xcc] %v399_v56  ;;  %v427_v59 = vrot.slane %v425_v57, 4  ;;  %v426_v60 = vrot.slane %v423_v58, 4 }
  0xc9   : > { %v431_v61 = vsel %vm429_vm7, %v425_v57, %v427_v59  ;;  %v428_v62 = vsel %vm251_vm3, %v426_v60, %v427_v59  ;;  %v930_v63 = vld [vmem:[#allocation2 + $0x8] ss:$12 sps:$4 sm:$0xff]  }
  0xca   : > { %435 = vst [vmem:[#allocation2 + $0x2c] sm:$0x3] %v431_v61  ;;  %v430_v0 = vsel %vm429_vm7, %v423_v58, %v428_v62  ;;  %v456_v1 = vpop.permute.xlu1 %455  ;;  %v454_v2 = vpop.permute.xlu0 %453  ;;  %v931_v4 = vld [vmem:[#allocation2 + $0x4] ss:$12 sps:$4 sm:$0xff]   ;;  %v933_v6 = vld [vmem:[#allocation2] ss:$12 sps:$4 sm:$0xff]   ;;  %854 = vmatpush3.bf16.msra.mxu1 %v930_v63 }
  0xcb   : > { %434 = vst [vmem:[#allocation2 + $0x24] sm:$0x33] %v430_v0  ;;  %v458_v7 = vrot.slane %v456_v1, 4  ;;  %v457_v8 = vrot.slane %v454_v2, 4  ;;  %563 = vmatprep.subr.bf16.mxu0 %v931_v4  ;;  %855 = vmatprep.subr.bf16.mxu1 %v1046_v16 }
  0xcc   : > { %564 = vmatpush1.bf16.msra.mxu0 %v933_v6 }
  0xcd   : > { %v462_v9 = vsel %vm460_vm8, %v456_v1, %v458_v7  ;;  %v459_v10 = vsel %vm251_vm3, %v457_v8, %v458_v7 }
  0xce   : > { %466 = vst [vmem:[#allocation2 + $0x2c] sm:$0xc] %v462_v9  ;;  %v461_v11 = vsel %vm460_vm8, %v454_v2, %v459_v10  ;;  %v487_v12 = vpop.permute.xlu1 %486  ;;  %v485_v13 = vpop.permute.xlu0 %484 }
  0xcf   : > { %465 = vst [vmem:[#allocation2 + $0x24] sm:$0xcc] %v461_v11  ;;  %v489_v14 = vrot.slane %v487_v12, 4  ;;  %v488_v15 = vrot.slane %v485_v13, 4 }
  0xd1   : > { %v493_v17 = vsel %vm491_vm9, %v487_v12, %v489_v14  ;;  %v490_v18 = vsel %vm251_vm3, %v488_v15, %v489_v14 }
  0xd2   : > { %497 = vst [vmem:[#allocation2 + $0x38] sm:$0x3] %v493_v17  ;;  %v492_v19 = vsel %vm491_vm9, %v485_v13, %v490_v18 }
  0xd3   : > { %496 = vst [vmem:[#allocation2 + $0x30] sm:$0x33] %v492_v19 }
  0xd5   : > { %v935_v20 = vld [vmem:[#allocation2 + $0x20] ss:$12 sps:$4 sm:$0xff]  }
  0xd6   : > { %v936_v22 = vld [vmem:[#allocation2 + $0x1c] ss:$12 sps:$4 sm:$0xff]   ;;  %v938_v23 = vld [vmem:[#allocation2 + $0x18] ss:$12 sps:$4 sm:$0xff]   ;;  %856 = vmatpush3.bf16.msra.mxu1 %v935_v20 }
  0xd7   : > { %565 = vmatprep.subr.bf16.mxu0 %v936_v22  ;;  %857 = vmatprep.subr.bf16.mxu1 %v1046_v16  ;;  %v226_v16 = vld [vmem:[%s1283_s2] sm:$0x7] }
  0xd8   : > { %566 = vmatpush1.bf16.msra.mxu0 %v938_v23  ;;  %vm227_vm12 = vcmp.ne.f32.partialorder %v226_v16, 0.0 }
  0xd9   : > { %v940_v24 = vld [vmem:[#allocation2 + $0x38] ss:$0 sps:$4 sm:$0x33]   ;;  %v668_v33 = vsel %vm227_vm12, 1, %v1051_v21 }
  0xda   : > { %v507_v25 = vld [vmem:[#allocation2 + $0x30] sm:$0x33]  ;;  %v561_v27 = vsel %vm553_vm10, %v940_v24, 0  ;;  %v680_v35 = vrot.slane %v668_v33, %v679_v31  ;;  %v672_v36 = vrot.slane %v668_v33, %v671_v32  ;;  %v676_v37 = vrot.slane %v668_v33, %v675_v34 }
  0xdb   : > { %v840_v26 = vcombine.high %v507_v25, %v507_v25  ;;  %v839_v28 = vcombine.low %v507_v25, %v507_v25  ;;  %858 = vmatpush3.bf16.msra.mxu1 %v561_v27 }
  0xdc   : > { %vm683_vm13 = vcmp.eq.s32.totalorder %v680_v35, 1  ;;  %vm681_vm14 = vcmp.eq.s32.totalorder %v672_v36, 1  ;;  %vm682_vm15 = vcmp.eq.s32.totalorder %v676_v37, 1 }
  0xdd   : > { %842 = vmatprep.subr.msk.bf16.mxu0 %vm553_vm10, %v840_v26  ;;  %v555_v30 = vsel %vm553_vm10, %v839_v28, 0 }
  0xde   : > { %568 = vmatpush1.bf16.msra.mxu0 %v555_v30  ;;  %860 = vmatmul.mubr.msk.bf16.vlgmr.msra.gmra.mrb[0].mxu1 %vm549_vm11, %v498_v29 }
  0xe1   : > { %843 = vmatmul.mubr.msk.bf16.vlgmr.msra.gmra.mrb[0].mxu0 %vm549_vm11, %v498_v29 }
 0x1b1   : > { %v638_v38 = vpop.f32.mrb[0].mxu1 }
 0x1b2   : > { %v646_v39 = vpack.c.bf16 %v638_v38, %v638_v38  ;;  %v686_v40 = vsel %vm683_vm13, %v638_v38, 0.0  ;;  %v861_v41 = vpop.f32.mrb[1].mxu1 }
 0x1b3   : > { %v641_v43 = vpop.f32.mrb[2].mxu1  ;;  %v697_v46 = vmul.f32 %v686_v40, %v686_v40  ;;  %v691_v55 = vsel %vm251_vm3, %v686_v40, 0.0 }
 0x1b4   : > { %v597_v42 = vpop.f32.mrb[0].mxu0  ;;  %v664_v45 = vrot.slane %v646_v39, %v1189_v5  ;;  %v862_v47 = vpop.f32.mrb[3].mxu1 }
 0x1b5   : > { %v684_v44 = vsel %vm681_vm14, %v597_v42, 0.0  ;;  %v599_v21 = vpop.f32.mrb[1].mxu0  ;;  %v701_v60 = vsel %vm251_vm3, %v697_v46, 0.0 }
 0x1b6   : > { %v688_v3 = vsel %vm251_vm3, %v684_v44, 0.0  ;;  %v695_v48 = vmul.f32 %v684_v44, %v684_v44  ;;  %v845_v49 = vpack.c.bf16 %v599_v21, %v597_v42  ;;  %v685_v50 = vsel %vm682_vm15, %v599_v21, 0.0  ;;  %v601_v51 = vpop.f32.mrb[2].mxu0 }
 0x1b7   : > { %v689_v52 = vsel %vm251_vm3, %v685_v50, 0.0  ;;  %v696_v53 = vmul.f32 %v685_v50, %v685_v50  ;;  %v602_v54 = vpop.f32.mrb[3].mxu0 }
 0x1b8   : > { %v657_v56 = vrot.slane %v845_v49, %v1189_v5  ;;  %v690_v57 = vadd.f32 %v689_v52, %v688_v3  ;;  %v698_v58 = vsel %vm251_vm3, %v695_v48, 0.0 }
 0x1b9   : > { %v699_v59 = vsel %vm251_vm3, %v696_v53, 0.0 }
 0x1ba   : > { %v665_v61 = vcombine.low %v657_v56, %v664_v45  ;;  %v692_v62 = vadd.f32 %v691_v55, %v690_v57  ;;  %v700_v63 = vadd.f32 %v699_v59, %v698_v58 }
 0x1bc   : > { %693 = vadd.xlane.f32.xlu0 %v692_v62  ;;  %v702_v0 = vadd.f32 %v701_v60, %v700_v63  ;;  %667 = vst [vmem:[%s214_s9] sm:$0x3f] %v665_v61 }
 0x1be   : > { %703 = vadd.xlane.f32.xlu1 %v702_v0 }
 0x1bf   : > { %985 = shalt.err (!%p982_p4)
}
 0x1c0   : > { %s986_s6 = scalar_lea.hbm %s1237_s25, 96  ;;  %s990_s29 = scalar_lea.hbm %s1284_s3, 192 }
 0x1c1   : > { %p987_p7 = scmp.ne.s32.totalorder %s1237_s25, %s986_s6  ;;  %p991_p0 = scmp.lt.u32.totalorder %s1237_s25, %s1284_s3 }
 0x1c2   : > { %p992_p1 = scmp.lt.u32.totalorder %s990_s29, %s986_s6  ;;  %p994_p6 = scmp.lt.u32.totalorder %s986_s6, %s1237_s25 }
 0x1c3   : > { %p988_p8 = pnand %p987_p7, %p1293_p11 }
 0x1c4   : > { %p993_p3 = por %p992_p1, %p991_p0 }
 0x1c5   : > { %p989_p9 = pneg %p988_p8 }
 0x1c6   : > { %p995_p12 = por %p994_p6, %p993_p3 }
 0x1c8   : > { %p996_p13 = pnand %p995_p12, %p989_p9 }
 0x1ca   : > { %999 = shalt.err (!%p996_p13)
}
 0x1cb   : > { %870 = dma.vmem_to_hbm [thread:$0]  (%p1293_p11), %s729_s13, 96, %s1237_s25, %s710_s10   ;;  %vm707_vm0 = vcmask 11264  }
 0x1cc   : > { %p221_p5 = scmp.lt.s32.totalorder %s1100_s19, 1 }
 0x1ce   : > { %s1301_s19 = smov (!%p221_p5, %s1100_s19), 1 }
 0x1cf   : > { %s830_s9 = sshll.u32 %s1301_s19, 2 }
 0x1d0   : > { %s224_s8 = scalar_lea.vmem %s1285_s4, %s830_s9 }
 0x249   : > { %v694_v5 = vpop.xlane.xlu0 %693 }
 0x24b   : > { %v704_v1 = vpop.xlane.xlu1 %703 }
 0x24c   : > { %v706_v2 = vsel %vm346_vm2, %v694_v5, %v704_v1 }
 0x24d   : > { %708 = vst.msk [vmem:[%s224_s8] sm:$0xf] %vm707_vm0, %v706_v2 }
 0x24e PF: > { %s743_s26 = sand.u32 1, %s1026_s15   ;;  %p1294_p10 = scmp.ne.s32.totalorder %s1289_s27, 0 }
 0x24f   : > { %p1295_p11 = scmp.ge.s32.totalorder %s1038_s18, 2  ;;  %s744_s13 = scalar_lea.sflag [#allocation5], %s743_s26 }
 0x251   : > { %p877_p2 = pnand %p1295_p11, %p1294_p10 }
 0x253   : > { %1021 = dma.done.wait (!%p877_p2), %s744_s13, 96  }
 0x254   : > { %1023 = vsyncadd (!%p877_p2), %s744_s13, 4294967200  ;;  %p18_p4 = scmp.ge.s32.totalorder %s1104_s21, 4   ;;  %s1296_s15 = smov %s1030_s16 }
 0x255   : > { %s1297_s16 = smov %s1034_s17  ;;  %s1298_s17 = smov %s1116_s24 }
 0x256   : > { %s1299_s18 = smov %s1104_s21  ;;  %20 = sbr.rel (!%p18_p4) target bundleno = 5 (0x5), region = 89 }
 0x25d   :  { %756 = vsyncpa [#allocation4], 1 }
 0x25e   :  { %758 = vsyncpa [#allocation4 + $0x1], 1 }
 0x25f   :  { %759 = vsyncpa [#allocation5], 1 }
 0x260   :  { %761 = vsyncpa [#allocation5 + $0x1], 1 }

</bundles_post_ra>
